<compile_context>
chip_gen: v7x
topology: tpu7x:2x2x1
jax: 0.10.0
libtpu: 0.0.40
codegen_flags: <defaults>
</compile_context>

<pallas_src>
import functools
import math

import jax
import jax.numpy as jnp
from jax.experimental import pallas as pl
from jax.experimental.pallas import tpu as pltpu


# ----------------------------------------------------------------------------- kernels
def _ffn_kernel_resident(x_ref, w1_ref, b1_ref, w2_ref, b2_ref, o_ref):
    """Whole hidden dim in VMEM: no accumulator, single pass per row tile."""
    h = jnp.dot(x_ref[...], w1_ref[...], preferred_element_type=jnp.float32)
    h = jnp.maximum(h + b1_ref[...], 0.0)
    out = jnp.dot(h.astype(w2_ref.dtype), w2_ref[...],
                  preferred_element_type=jnp.float32)
    o_ref[...] = (out + b2_ref[...]).astype(o_ref.dtype)


def _ffn_kernel_htiled(x_ref, w1_ref, b1_ref, w2_ref, b2_ref, o_ref, acc_ref):
    """Hidden dim streamed in slices; f32 accumulator resident per row tile."""
    hb = pl.program_id(1)

    @pl.when(hb == 0)
    def _init():
        # Fold the b2 add into the accumulator init (saves an epilogue add).
        acc_ref[...] = jnp.broadcast_to(b2_ref[...].astype(jnp.float32),
                                        acc_ref.shape)

    # Per-slice ReLU is exact: hidden units are disjoint across slices.
    h = jnp.dot(x_ref[...], w1_ref[...], preferred_element_type=jnp.float32)
    h = jnp.maximum(h + b1_ref[...], 0.0)
    acc_ref[...] += jnp.dot(h.astype(w2_ref.dtype), w2_ref[...],
                            preferred_element_type=jnp.float32)

    @pl.when(hb == pl.num_programs(1) - 1)
    def _finalize():
        o_ref[...] = acc_ref[...].astype(o_ref.dtype)


# ----------------------------------------------------------------------------- helpers
def _round_up(x, m):
    return ((x + m - 1) // m) * m


def _round_down(x, m):
    return (x // m) * m


_VMEM_CAP_CACHE = None


def _vmem_capacity_bytes():
    """Physical per-TensorCore VMEM (64 MiB on v7x, 128 MiB on v5e/v6e)."""
    global _VMEM_CAP_CACHE
    if _VMEM_CAP_CACHE is None:
        cap = None
        try:
            info = pltpu.get_tpu_info()
            cap = getattr(info, "vmem_capacity_bytes", None)
        except Exception:
            cap = None
        _VMEM_CAP_CACHE = int(cap) if cap else (64 << 20)  # conservative default
    return _VMEM_CAP_CACHE


def _pick_row_tile(n_rows, target):
    """Return (tm, n_pad): 128-aligned row tile, preferring an exact divisor of
    n_rows (no activation pad copy); pads only as a last resort."""
    align = 128 if n_rows >= 128 else 8
    target = max(align, _round_down(target, align))
    if n_rows <= target:
        return n_rows, n_rows                       # one full tile, no pad
    t = target
    while t >= align:
        if n_rows % t == 0:
            return t, n_rows                        # exact divisor, no pad
        t -= align
    return target, _round_up(n_rows, target)        # fallback: pad


def _pick_hidden_tile(hidden, target):
    """Largest lane-aligned (mult of 128) divisor of `hidden` <= target, falling
    back to the full hidden dim when it can't be tiled cleanly."""
    if hidden <= target or hidden % 128 != 0:
        return hidden
    for t in range(target, 127, -128):
        if hidden % t == 0:
            return t
    return hidden


def _resident_need(tm, d_model, hidden, x_bytes, w_bytes, o_bytes):
    return (2 * tm * d_model * (x_bytes + o_bytes)        # X / out double-buffered
            + 4 * d_model * hidden * w_bytes               # W1 + W2, double-buffered
            + tm * hidden * 4                              # f32 intermediate h
            + 4 * (hidden + d_model))                      # biases


def _tiled_need(tm, t_h, d_model, x_bytes, w_bytes, o_bytes):
    return (2 * tm * d_model * (x_bytes + o_bytes)
            + 4 * d_model * t_h * w_bytes                  # W1/W2 slices, double-buffered
            + tm * d_model * 4                             # f32 accumulator
            + tm * t_h * 4                                 # f32 intermediate h
            + 4 * (t_h + d_model))


# ----------------------------------------------------------------------------- wrapper
@functools.partial(jax.jit, static_argnames=("tm", "t_h_target"))
def feed_forward(x, w1, b1, w2, b2, *, tm=256, t_h_target=512):
    """x: (batch, seq, d_model).  w1: (d_model, hidden), w2: (hidden, d_model).

    The MXU compute dtype is the dtype of the weights: for real workloads pre-cast
    w1/w2 to bf16 ONCE outside this function (no per-call cast is done here).
    Accumulation is f32 and the output keeps x's dtype.
    """
    batch, seq, d_model = x.shape
    hidden = w1.shape[1]
    out_dtype = x.dtype
    b1 = b1.reshape(1, hidden)
    b2 = b2.reshape(1, d_model)

    compute_dtype = w1.dtype
    n_rows = batch * seq
    x2d = x.reshape(n_rows, d_model)
    if x2d.dtype != compute_dtype:
        x2d = x2d.astype(compute_dtype)

    x_bytes = jnp.dtype(compute_dtype).itemsize
    w_bytes = jnp.dtype(w1.dtype).itemsize
    o_bytes = jnp.dtype(out_dtype).itemsize

    budget = int(_vmem_capacity_bytes() * 0.85)   # headroom below physical VMEM

    # ---- row tile -----------------------------------------------------------
    tm_eff, n_pad = _pick_row_tile(n_rows, tm)
    # Keep >=2 row tiles so the "parallel" axis can shard across v7x's 2 TCs.
    if n_pad // tm_eff < 2 and n_rows >= 256:
        tm_eff, n_pad = _pick_row_tile(n_rows, max(128, n_rows // 2))

    # ---- weights resident vs hidden-tiled ------------------------------------
    resident = _resident_need(tm_eff, d_model, hidden,
                              x_bytes, w_bytes, o_bytes) <= budget
    t_h = hidden
    if not resident:
        # Weights must be streamed: raise the row tile target so arithmetic
        # intensity (~ tm flop/byte) gets closer to the compute/HBM ratio.
        tm_eff, n_pad = _pick_row_tile(n_rows, max(tm, 1024))
        if n_pad // tm_eff < 2 and n_rows >= 256:
            tm_eff, n_pad = _pick_row_tile(n_rows, max(128, n_rows // 2))
        t_h = _pick_hidden_tile(hidden, t_h_target)
        if t_h == hidden:
            resident = True          # hidden can't be tiled cleanly; keep it whole
        else:
            while (t_h > 128 and
                   _tiled_need(tm_eff, t_h, d_model,
                               x_bytes, w_bytes, o_bytes) > budget):
                smaller = _pick_hidden_tile(hidden, t_h - 128)
                if smaller >= t_h:
                    break
                t_h = smaller

    if n_pad != n_rows:
        # TODO(synk): replace this pad with a masked store on the ragged last tile.
        x2d = jnp.pad(x2d, ((0, n_pad - n_rows), (0, 0)))

    n_row_tiles = n_pad // tm_eff

    # Advisory cost for XLA scheduling (weight re-streaming counted when tiled).
    flops = 4 * n_rows * d_model * hidden
    weight_bytes = 2 * d_model * hidden * w_bytes
    bytes_accessed = (n_rows * d_model * (x_bytes + o_bytes)
                      + weight_bytes * (1 if resident else n_row_tiles)
                      + (hidden + d_model) * 4)

    if resident:
        need = _resident_need(tm_eff, d_model, hidden, x_bytes, w_bytes, o_bytes)
        grid = (n_row_tiles,)
        in_specs = [
            pl.BlockSpec((tm_eff, d_model), lambda i: (i, 0)),   # X row tile
            pl.BlockSpec((d_model, hidden), lambda i: (0, 0)),   # W1 (resident)
            pl.BlockSpec((1, hidden), lambda i: (0, 0)),         # b1 (resident)
            pl.BlockSpec((hidden, d_model), lambda i: (0, 0)),   # W2 (resident)
            pl.BlockSpec((1, d_model), lambda i: (0, 0)),        # b2 (resident)
        ]
        out_specs = pl.BlockSpec((tm_eff, d_model), lambda i: (i, 0))
        scratch_shapes = []
        kernel = _ffn_kernel_resident
        dims = ("parallel",)
    else:
        need = _tiled_need(tm_eff, t_h, d_model, x_bytes, w_bytes, o_bytes)
        grid = (n_row_tiles, hidden // t_h)
        in_specs = [
            pl.BlockSpec((tm_eff, d_model), lambda i, h: (i, 0)),  # X row tile
            pl.BlockSpec((d_model, t_h), lambda i, h: (0, h)),     # W1 slice
            pl.BlockSpec((1, t_h), lambda i, h: (0, h)),           # b1 slice
            pl.BlockSpec((t_h, d_model), lambda i, h: (h, 0)),     # W2 slice
            pl.BlockSpec((1, d_model), lambda i, h: (0, 0)),       # b2
        ]
        out_specs = pl.BlockSpec((tm_eff, d_model), lambda i, h: (i, 0))
        scratch_shapes = [pltpu.VMEM((tm_eff, d_model), jnp.float32)]
        kernel = _ffn_kernel_htiled
        dims = ("parallel", "arbitrary")

    vmem_limit = int(min(max(need + need // 4 + (4 << 20), 16 << 20), budget))

    out2d = pl.pallas_call(
        kernel,
        out_shape=jax.ShapeDtypeStruct((n_pad, d_model), out_dtype),
        grid_spec=pltpu.PrefetchScalarGridSpec(
            num_scalar_prefetch=0,
            grid=grid,
            in_specs=in_specs,
            out_specs=out_specs,
            scratch_shapes=scratch_shapes,
        ),
        compiler_params=pltpu.CompilerParams(
            dimension_semantics=dims,
            vmem_limit_bytes=vmem_limit,
        ),
        cost_estimate=pl.CostEstimate(
            flops=flops, transcendentals=0, bytes_accessed=bytes_accessed),
    )(x2d, w1, b1, w2, b2)

    if n_pad != n_rows:
        out2d = out2d[:n_rows]
    return out2d.reshape(batch, seq, d_model)


# ----------------------------------------------------------------------------- init
def init_params(key, d_model, ffn_hidden, dtype=jnp.float32):
    """Deterministic init mirroring nn.Linear's U(-1/sqrt(fan_in), 1/sqrt(fan_in))."""
    k1, k2, k3, k4 = jax.random.split(key, 4)
    bound1 = 1.0 / math.sqrt(d_model)
    bound2 = 1.0 / math.sqrt(ffn_hidden)
    # stored as (in_features, out_features) == W.T relative to PyTorch
    w1 = jax.random.uniform(k1, (d_model, ffn_hidden), dtype, -bound1, bound1)
    b1 = jax.random.uniform(k2, (1, ffn_hidden), dtype, -bound1, bound1)
    w2 = jax.random.uniform(k3, (ffn_hidden, d_model), dtype, -bound2, bound2)
    b2 = jax.random.uniform(k4, (1, d_model), dtype, -bound2, bound2)
    return w1, b1, w2, b2


if __name__ == "__main__":
    # Small demo shapes (at d_model=32 / hidden=64 the weight-resident path is taken;
    # realistic perf should be measured at >= (1024, 4096) shapes in bf16).
    d_model, ffn_hidden = 32, 64
    batch, seq = 2, 8

    key = jax.random.PRNGKey(0)
    kx, kp = jax.random.split(key)
    x = jax.random.normal(kx, (batch, seq, d_model), dtype=jnp.float32)
    w1, b1, w2, b2 = init_params(kp, d_model, ffn_hidden)

    ref = jnp.maximum(x @ w1 + b1[0], 0.0) @ w2 + b2[0]

    # f32 path: tight tolerance against the plain-JAX reference.
    out = jax.block_until_ready(feed_forward(x, w1, b1, w2, b2))
    assert out.shape == (batch, seq, d_model)
    assert jnp.allclose(out, ref, atol=1e-5, rtol=1e-5)

    # bf16 MXU path: weights pre-cast ONCE outside the kernel (no per-call cast).
    w1_bf, w2_bf = w1.astype(jnp.bfloat16), w2.astype(jnp.bfloat16)
    out_bf16 = jax.block_until_ready(feed_forward(x, w1_bf, b1, w2_bf, b2))
    assert out_bf16.dtype == x.dtype
    assert jnp.allclose(out_bf16, ref, atol=1e-1, rtol=1e-1)

    print("KERNEL_OK")
</pallas_src>

<mosaic_0001>
module attributes {stable_mosaic.version = 11 : i64} {
  func.func @_ffn_kernel_resident(%arg0: i32, %arg1: memref<16x32xf32, #tpu.memory_space<vmem>>, %arg2: memref<32x64xf32, #tpu.memory_space<vmem>>, %arg3: memref<1x64xf32, #tpu.memory_space<vmem>>, %arg4: memref<64x32xf32, #tpu.memory_space<vmem>>, %arg5: memref<1x32xf32, #tpu.memory_space<vmem>>, %arg6: memref<16x32xf32, #tpu.memory_space<vmem>>) attributes {dimension_semantics = [#tpu.dimension_semantics<parallel>], iteration_bounds = array<i64: 1>, scalar_prefetch = 0 : i64, scratch_operands = 0 : i64, tpu.core_type = #tpu.core_type<tc>, window_params = [{transform_indices = @transform_0, window_bounds = array<i64: 16, 32>}, {pipeline_mode = #tpu.pipeline_mode<synchronous>, transform_indices = @transform_1, window_bounds = array<i64: 32, 64>}, {pipeline_mode = #tpu.pipeline_mode<synchronous>, transform_indices = @transform_2, window_bounds = array<i64: 1, 64>}, {pipeline_mode = #tpu.pipeline_mode<synchronous>, transform_indices = @transform_3, window_bounds = array<i64: 64, 32>}, {pipeline_mode = #tpu.pipeline_mode<synchronous>, transform_indices = @transform_4, window_bounds = array<i64: 1, 32>}, {transform_indices = @transform_5, window_bounds = array<i64: 16, 32>}]} {
    %c0 = arith.constant 0 : index
    %c0_0 = arith.constant 0 : index
    %0 = vector.load %arg1[%c0, %c0_0] : memref<16x32xf32, #tpu.memory_space<vmem>>, vector<16x32xf32>
    %c0_1 = arith.constant 0 : index
    %c0_2 = arith.constant 0 : index
    %1 = vector.load %arg2[%c0_1, %c0_2] : memref<32x64xf32, #tpu.memory_space<vmem>>, vector<32x64xf32>
    %cst = arith.constant dense<0.000000e+00> : vector<16x64xf32>
    %2 = tpu.matmul %0, %1, %cst {dimension_numbers = #tpu.dot_dimension_numbers<[1], [0], [0], [1], [0, 0, 1, 1], [], []>} : vector<16x32xf32>, vector<32x64xf32>, vector<16x64xf32> -> vector<16x64xf32>
    %c0_3 = arith.constant 0 : index
    %c0_4 = arith.constant 0 : index
    %3 = vector.load %arg3[%c0_3, %c0_4] : memref<1x64xf32, #tpu.memory_space<vmem>>, vector<1x64xf32>
    %4 = vector.broadcast %3 : vector<1x64xf32> to vector<16x64xf32>
    %5 = arith.addf %2, %4 : vector<16x64xf32>
    %cst_5 = arith.constant 0.000000e+00 : f32
    %6 = vector.broadcast %cst_5 : f32 to vector<16x64xf32>
    %7 = arith.maximumf %5, %6 : vector<16x64xf32>
    %c0_6 = arith.constant 0 : index
    %c0_7 = arith.constant 0 : index
    %8 = vector.load %arg4[%c0_6, %c0_7] : memref<64x32xf32, #tpu.memory_space<vmem>>, vector<64x32xf32>
    %cst_8 = arith.constant dense<0.000000e+00> : vector<16x32xf32>
    %9 = tpu.matmul %7, %8, %cst_8 {dimension_numbers = #tpu.dot_dimension_numbers<[1], [0], [0], [1], [0, 0, 1, 1], [], []>} : vector<16x64xf32>, vector<64x32xf32>, vector<16x32xf32> -> vector<16x32xf32>
    %c0_9 = arith.constant 0 : index
    %c0_10 = arith.constant 0 : index
    %10 = vector.load %arg5[%c0_9, %c0_10] : memref<1x32xf32, #tpu.memory_space<vmem>>, vector<1x32xf32>
    %11 = vector.broadcast %10 : vector<1x32xf32> to vector<16x32xf32>
    %12 = arith.addf %9, %11 : vector<16x32xf32>
    %c0_11 = arith.constant 0 : index
    %c0_12 = arith.constant 0 : index
    %13 = vector.load %arg6[%c0_11, %c0_12] : memref<16x32xf32, #tpu.memory_space<vmem>>, vector<16x32xf32>
    tpu.vector_store %arg6[%c0_11, %c0_12], %12 {strides = array<i32>} : memref<16x32xf32, #tpu.memory_space<vmem>>, vector<16x32xf32>,
    return
  }
  func.func @transform_0(%arg0: i32) -> (i32, i32) {
    %c0_i32 = arith.constant 0 : i32
    %c0_i32_0 = arith.constant 0 : i32
    return %arg0, %c0_i32 : i32, i32
  }
  func.func @transform_1(%arg0: i32) -> (i32, i32) {
    %c0_i32 = arith.constant 0 : i32
    %c0_i32_0 = arith.constant 0 : i32
    %c0_i32_1 = arith.constant 0 : i32
    return %c0_i32, %c0_i32_0 : i32, i32
  }
  func.func @transform_2(%arg0: i32) -> (i32, i32) {
    %c0_i32 = arith.constant 0 : i32
    %c0_i32_0 = arith.constant 0 : i32
    %c0_i32_1 = arith.constant 0 : i32
    return %c0_i32, %c0_i32_0 : i32, i32
  }
  func.func @transform_3(%arg0: i32) -> (i32, i32) {
    %c0_i32 = arith.constant 0 : i32
    %c0_i32_0 = arith.constant 0 : i32
    %c0_i32_1 = arith.constant 0 : i32
    return %c0_i32, %c0_i32_0 : i32, i32
  }
  func.func @transform_4(%arg0: i32) -> (i32, i32) {
    %c0_i32 = arith.constant 0 : i32
    %c0_i32_0 = arith.constant 0 : i32
    %c0_i32_1 = arith.constant 0 : i32
    return %c0_i32, %c0_i32_0 : i32, i32
  }
  func.func @transform_5(%arg0: i32) -> (i32, i32) {
    %c0_i32 = arith.constant 0 : i32
    %c0_i32_0 = arith.constant 0 : i32
    return %arg0, %c0_i32 : i32, i32
  }
}

</mosaic_0001>

<bundles_post_ra>
// kernel: feed_forward.1
= control target key start
LH: loop header
LB: loop body
LE: loop exit
PB: predicated region body
PF: predicated region fallthrough
CT: control target
= control target key end

     0   :  { %vm34_vm0 = vcmask 261120   ;;  %s433_s0 = inlined_call_operand.vmem [shape: f32[16,32], index: 0, kind: input, shape index: {}]   ;;  %s434_s1 = inlined_call_operand.vmem [shape: f32[32,64], index: 1, kind: input, shape index: {}]   ;;  %s435_s2 = inlined_call_operand.vmem [shape: f32[1,64], index: 2, kind: input, shape index: {}]   ;;  %s436_s3 = inlined_call_operand.vmem [shape: f32[64,32], index: 3, kind: input, shape index: {}]   ;;  %s437_s4 = inlined_call_operand.vmem [shape: f32[1,32], index: 4, kind: input, shape index: {}]   ;;  %s438_s5 = inlined_call_operand.hbm [shape: f32[16,32], index: 5, kind: output, shape index: {}]  }
   0x1   :  { %v23_v0 = vld [vmem:[%s434_s1] sm:$0xff]  ;;  %v24_v1 = vld [vmem:[%s434_s1 + $0x8] sm:$0xff]  ;;  %v25_v2 = vld [vmem:[%s434_s1 + $0x10] sm:$0xff] }
   0x2   :  { %v285_v3 = vpack.c.bf16 %v24_v1, %v23_v0  ;;  %v26_v4 = vld [vmem:[%s434_s1 + $0x18] sm:$0xff]  ;;  %v21_v5 = vld [vmem:[%s433_s0] sm:$0xff]  ;;  %v119_v8 = vld [vmem:[%s436_s3 + $0x8] sm:$0xff] }
   0x3   :  { %v289_v6 = vpack.c.bf16 %v26_v4, %v25_v2  ;;  %263 = vmatprep.mubr.msk.f32.mxu0 %vm34_vm0, %v21_v5  ;;  %v118_v7 = vld [vmem:[%s436_s3] sm:$0xff]  ;;  %v120_v9 = vld [vmem:[%s436_s3 + $0x10] sm:$0xff]  ;;  %v121_v11 = vld [vmem:[%s436_s3 + $0x18] sm:$0xff] }
   0x4   :  { %286 = vmatprep.subr.bf16.mxu0 %v285_v3  ;;  %v293_v10 = vpack.c.bf16 %v119_v8, %v118_v7  ;;  %v297_v12 = vpack.c.bf16 %v121_v11, %v120_v9  ;;  %v122_v13 = vld [vmem:[%s436_s3 + $0x20] sm:$0xff]  ;;  %v123_v14 = vld [vmem:[%s436_s3 + $0x28] sm:$0xff] }
   0x5   :  { %288 = vmatpush3.bf16.msra.mxu0 %v285_v3 }
   0x6   :  { %10 = vsyncpa [#allocation3], 0  ;;  %290 = vmatprep.subr.bf16.mxu0 %v289_v6  ;;  %294 = vmatprep.subr.bf16.mxu1 %v293_v10  ;;  %v301_v15 = vpack.c.bf16 %v123_v14, %v122_v13  ;;  %v22_v16 = vld [vmem:[%s433_s0 + $0x8] sm:$0xff]  ;;  %v124_v17 = vld [vmem:[%s436_s3 + $0x30] sm:$0xff]  ;;  %vm133_vm1 = vcmask 523264  }
   0x7   :  { %296 = vmatpush3.bf16.msra.mxu1 %v293_v10  ;;  %v125_v18 = vld [vmem:[%s436_s3 + $0x38] sm:$0xff]  ;;  %v233_v20 = vld [vmem:[%s435_s2] ss:$0 sm:$0xff]  ;;  %s336_s3 = smov [#allocation2]  }
   0x8   :  { %298 = vmatprep.subr.bf16.mxu1 %v297_v12  ;;  %v305_v19 = vpack.c.bf16 %v125_v18, %v124_v17  ;;  %v236_v27 = vld [vmem:[%s437_s4] ss:$0 sm:$0xff]  ;;  %s222_s23 = sshll.u32 %s336_s3, 4  ;;  %s223_s23 = int_to_ptr.vmem [resolvable:$true] %s222_s23 }
   0x9   :  { %292 = vmatpush3.bf16.msra.mxu0 %v289_v6  ;;  %s312_s2 = scalar_lea.vmem %s223_s23, 256  ;;  %p317_p1 = scmp.lt.s32.totalorder %s223_s23, %s223_s23 }
   0xa   :  { %p313_p0 = scmp.ne.s32.totalorder %s223_s23, %s312_s2  ;;  %p318_p2 = scmp.lt.s32.totalorder %s312_s2, %s312_s2 }
   0xb   :  { %300 = vmatpush3.bf16.msra.mxu1 %v297_v12 }
   0xc   :  { %264 = vmatmul.mubr.msk.f32.vlgmr.msra.gmra.mrb[0].mxu0 %vm34_vm0, %v22_v16  ;;  %302 = vmatprep.subr.bf16.mxu1 %v301_v15  ;;  %p319_p3 = por %p318_p2, %p317_p1 }
   0xe   :  { %p320_p4 = pnand %p319_p3, %p313_p0 }
   0xf   :  { %304 = vmatpush3.bf16.msra.mxu1 %v301_v15 }
  0x10   :  { %306 = vmatprep.subr.bf16.mxu1 %v305_v19 }
  0x13   :  { %308 = vmatpush3.bf16.msra.mxu1 %v305_v19 }
  0xdf   :  { %v265_v21 = vpop.f32.mrb[0].mxu0 }
  0xe0   :  { %v113_v22 = vadd.f32 %v265_v21, %v233_v20  ;;  %v107_v23 = vpop.f32.mrb[1].mxu0 }
  0xe1   :  { %v108_v24 = vadd.f32 %v233_v20, %v107_v23 }
  0xe2   :  { %v117_v26 = vmax.f32 %v113_v22, 0.0 }
  0xe3   :  { %v116_v25 = vmax.f32 %v108_v24, 0.0 }
  0xe5   :  { %282 = vmatprep.mubr.msk.f32.mxu1 %vm133_vm1, %v116_v25 }
  0xe6   :  { %283 = vmatmul.mubr.msk.f32.vlgmr.msra.gmra.mrb[0].mxu1 %vm133_vm1, %v117_v26 }
 0x1b9   :  { %v284_v28 = vpop.f32.mrb[0].mxu1 }
 0x1ba   :  { %v212_v29 = vadd.f32 %v284_v28, %v236_v27  ;;  %v206_v30 = vpop.f32.mrb[1].mxu1 }
 0x1bb   :  { %v207_v31 = vadd.f32 %v236_v27, %v206_v30 }
 0x1bc   :  { %216 = vst.msk [vmem:[#allocation2 + $0x8] sm:$0xff] %vm34_vm0, %v212_v29 }
 0x1bd   :  { %215 = vst.msk [vmem:[#allocation2] sm:$0xff] %vm34_vm0, %v207_v31 }
 0x1be   :  { %323 = shalt.err (!%p320_p4)
}
 0x1bf   :  { %s324_s25 = scalar_lea.hbm %s438_s5, 256 }
 0x1c0   :  { %p325_p5 = scmp.ne.s32.totalorder %s438_s5, %s324_s25  ;;  %p328_p6 = scmp.lt.u32.totalorder %s324_s25, %s438_s5 }
 0x1c2   :  { %p330_p7 = pnand %p328_p6, %p325_p5 }
 0x1c4   :  { %333 = shalt.err (!%p330_p7)
}
 0x1c5   :  { %s337_s30 = smov 128   ;;  %s338_s6 = smov 8  }
 0x1c6   :  { %228 = dma.vmem_to_hbm [thread:$0]  %s223_s23, 256, %s438_s5, [#allocation3], %s337_s30, %s337_s30, %s338_s6  }
 0x1c7   :  { %334 = dma.done.wait [#allocation3], 256  }
 0x1c8   :  { %335 = vsyncadd [#allocation3], 4294967040 }
 0x1c9   :  { %232 = vsyncpa [#allocation3], 1 }

</bundles_post_ra>
